<compile_context>
chip_gen: v7x
topology: tpu7x:2x2x1
jax: 0.10.0
libtpu: 0.0.40
codegen_flags: <defaults>
</compile_context>

<pallas_src>
import functools

import jax
import jax.numpy as jnp
from jax import lax
from jax.experimental import pallas as pl
from jax.experimental.pallas import tpu as pltpu

LANE = 128
# Channel dims carried through the network, padded to full 128-lane vregs.
C1_PAD = 128   # conv1 output channels (real c1 = 8)
C2_PAD = 128   # conv2 output channels (real c2 = 16)
CN_PAD = 128   # neck output channels  (real c_out = 32)


def _round_up(x, m):
    return ((x + m - 1) // m) * m


def _vmem_cap_bytes():
    try:
        return int(pltpu.get_tpu_info().vmem_capacity_bytes)
    except Exception:            # conservative fallback (v7x per-TC VMEM)
        return 64 * 1024 * 1024


# ----------------------------------------------------------------------------
# Fused Pallas kernel: conv-as-matmul (bf16 in, f32 acc, fused bias + ReLU)
# -> bf16 feature tile, then the 1x1 neck as a second MXU matmul written
# channel-major (C, M) so the final NHWC->NCHW transpose disappears.
# ----------------------------------------------------------------------------
def _fused_conv_neck_kernel(a_ref, w1_ref, b1_ref, w2t_ref, b2_ref,
                            f_ref, n_ref, *, apply_relu):
    # a:(TM,K) bf16  w1:(K,Cf) bf16  b1:(1,Cf) f32  w2t:(Cn,Cf) bf16  b2:(Cn,1)
    acc = jnp.dot(a_ref[...], w1_ref[...], preferred_element_type=jnp.float32)
    acc = acc + b1_ref[...]
    if apply_relu:
        acc = jnp.maximum(acc, 0.0)
    f_bf = acc.astype(jnp.bfloat16)
    f_ref[...] = f_bf                                  # backbone feature, bf16
    # Neck output pre-transposed: (Cn, TM) = w2t @ f^T  (A @ B^T on the MXU).
    nt = lax.dot_general(w2t_ref[...], f_bf,
                         dimension_numbers=(((1,), (1,)), ((), ())),
                         preferred_element_type=jnp.float32)
    n_ref[...] = nt + b2_ref[...]                      # network boundary: f32


def _choose_tm(m_per):
    for tm in (512, 256, 128):
        if m_per >= tm and m_per % tm == 0:
            return tm
    if m_per >= 512:
        return 512
    return _round_up(m_per, 16)      # small-M fallback: bf16 sublane packing


def fused_conv_neck(a, w1, b1, w2t, b2, *, apply_relu=True):
    """a: (BN, M_per, K) bf16 im2col rows (per camera).
       Returns f: (BN, M_per, Cf) bf16 and n: (BN, Cn, M_per) f32."""
    BN, M_per, K = a.shape
    Cf = w1.shape[1]
    Cn = w2t.shape[0]
    assert K % LANE == 0 and Cf % LANE == 0 and Cn % LANE == 0

    a = a.astype(jnp.bfloat16)
    TM = _choose_tm(M_per)
    M_pad = _round_up(M_per, TM)
    if M_pad != M_per:
        a = jnp.pad(a, ((0, 0), (0, M_pad - M_per), (0, 0)))

    grid = (BN, M_pad // TM)

    # Actual VMEM footprint (double-buffered per-step blocks; the weight blocks
    # keep the same index so they are fetched once) + slack, clamped per chip.
    tile_bytes = (2 * TM * K * 2 + 2 * TM * Cf * 2 + 2 * Cn * TM * 4
                  + 2 * (K * Cf * 2 + Cf * 4 + Cn * Cf * 2 + Cn * 4))
    vmem_limit = min(max(int(1.5 * tile_bytes), 8 * 1024 * 1024),
                     int(0.55 * _vmem_cap_bytes()))

    cost = pl.CostEstimate(
        flops=2 * BN * M_pad * K * Cf + 2 * BN * M_pad * Cf * Cn,
        transcendentals=0,
        bytes_accessed=(BN * M_pad * K * 2 + K * Cf * 2 + Cn * Cf * 2
                        + Cf * 4 + Cn * 4 + BN * M_pad * Cf * 2
                        + BN * Cn * M_pad * 4),
    )

    f, n = pl.pallas_call(
        functools.partial(_fused_conv_neck_kernel, apply_relu=apply_relu),
        out_shape=(jax.ShapeDtypeStruct((BN, M_pad, Cf), jnp.bfloat16),
                   jax.ShapeDtypeStruct((BN, Cn, M_pad), jnp.float32)),
        grid=grid,
        in_specs=[
            pl.BlockSpec((None, TM, K), lambda bn, m: (bn, m, 0)),
            pl.BlockSpec((K, Cf), lambda bn, m: (0, 0)),
            pl.BlockSpec((1, Cf), lambda bn, m: (0, 0)),
            pl.BlockSpec((Cn, Cf), lambda bn, m: (0, 0)),
            pl.BlockSpec((Cn, 1), lambda bn, m: (0, 0)),
        ],
        out_specs=(
            pl.BlockSpec((None, TM, Cf), lambda bn, m: (bn, m, 0)),
            pl.BlockSpec((None, Cn, TM), lambda bn, m: (bn, 0, m)),
        ),
        compiler_params=pltpu.CompilerParams(
            dimension_semantics=("parallel", "parallel"),
            vmem_limit_bytes=vmem_limit,
        ),
        cost_estimate=cost,
    )(a, w1, b1, w2t, b2)

    if M_pad != M_per:
        f = f[:, :M_per, :]
        n = n[:, :, :M_per]
    return f, n


# ----------------------------------------------------------------------------
# JAX-side glue: bf16 im2col for the 3x3 stride-2 convs and one-time weight
# padding / layout prep (outside the per-frame path).
# ----------------------------------------------------------------------------
def _im2col_3x3_s2(x_nhwc):
    """x: (BN, H, W, C) bf16 -> ((BN, Ho*Wo, 9*C) bf16, Ho, Wo)."""
    BN, H, W, C = x_nhwc.shape
    x = jnp.pad(x_nhwc, ((0, 0), (1, 1), (1, 1), (0, 0)))
    Ho = (H + 2 - 3) // 2 + 1
    Wo = (W + 2 - 3) // 2 + 1
    # TODO(synk): replace with an in-kernel 9-tap reduction (9-long grid axis,
    # memory_space=pl.ANY + pltpu.make_async_copy) -- BlockSpec cannot express
    # the overlapping stride-2 windows; kept JAX-side for robustness.
    patches = [x[:, i:i + 2 * Ho:2, j:j + 2 * Wo:2, :]
               for i in range(3) for j in range(3)]
    cols = jnp.concatenate(patches, axis=-1)
    return cols.reshape(BN, Ho * Wo, 9 * C), Ho, Wo


def _prep_conv3x3(w, b, cin_in, k_pad, cout_pad):
    """(Cout,Cin,3,3) conv weight -> (k_pad, cout_pad) bf16 matrix in
    kernel-position-major / input-channel-minor order (matches im2col);
    padded K-rows / output channels / bias entries are exactly zero."""
    cout, cin = w.shape[0], w.shape[1]
    w = jnp.pad(w, ((0, 0), (0, cin_in - cin), (0, 0), (0, 0)))
    w_mat = jnp.transpose(w, (2, 3, 1, 0)).reshape(9 * cin_in, cout)
    w_mat = jnp.pad(w_mat, ((0, k_pad - 9 * cin_in), (0, cout_pad - cout)))
    b_row = jnp.pad(b, (0, cout_pad - cout)).reshape(1, cout_pad)
    return w_mat.astype(jnp.bfloat16), b_row.astype(jnp.float32)


def _prep_neck1x1(w, b, cin_pad, cout_pad):
    """(Cout,Cin,1,1) -> channel-major (cout_pad, cin_pad) bf16 (the layout the
    fused A@B^T neck matmul wants) and (cout_pad, 1) f32 bias."""
    cout, cin = w.shape[0], w.shape[1]
    w2t = jnp.pad(w.reshape(cout, cin),
                  ((0, cout_pad - cout), (0, cin_pad - cin)))
    b_col = jnp.pad(b, (0, cout_pad - cout)).reshape(cout_pad, 1)
    return w2t.astype(jnp.bfloat16), b_col.astype(jnp.float32)


def prepare_weights(params, c_in):
    """One-time (outside the per-frame path) weight padding / cast / layout."""
    k1_pad = _round_up(9 * c_in, LANE)
    return {
        "conv1": _prep_conv3x3(params["conv1_w"], params["conv1_b"],
                               cin_in=c_in, k_pad=k1_pad, cout_pad=C1_PAD),
        "conv2": _prep_conv3x3(params["conv2_w"], params["conv2_b"],
                               cin_in=C1_PAD, k_pad=9 * C1_PAD,
                               cout_pad=C2_PAD),
        "neck0": _prep_neck1x1(params["neck0_w"], params["neck0_b"],
                               cin_pad=C1_PAD, cout_pad=CN_PAD),
        "neck1": _prep_neck1x1(params["neck1_w"], params["neck1_b"],
                               cin_pad=C2_PAD, cout_pad=CN_PAD),
    }


def make_grid_mask(H, W, d=4, keep=2):
    """Deterministic synthetic GridMask (the reference GridMask is prob-gated /
    identity at inference; a fixed mask keeps the elementwise path exercised)."""
    hh = jnp.arange(H)[:, None] % d
    ww = jnp.arange(W)[None, :] % d
    return jnp.where((hh < keep) & (ww < keep), 0.0, 1.0).astype(jnp.float32)


def init_params(key, c_in=4, c1=8, c2=16, c_out=32):
    ks = jax.random.split(key, 8)
    return {
        "conv1_w": 0.1 * jax.random.normal(ks[0], (c1, c_in, 3, 3), jnp.float32),
        "conv1_b": 0.01 * jax.random.normal(ks[1], (c1,), jnp.float32),
        "conv2_w": 0.1 * jax.random.normal(ks[2], (c2, c1, 3, 3), jnp.float32),
        "conv2_b": 0.01 * jax.random.normal(ks[3], (c2,), jnp.float32),
        "neck0_w": 0.1 * jax.random.normal(ks[4], (c_out, c1, 1, 1), jnp.float32),
        "neck0_b": 0.01 * jax.random.normal(ks[5], (c_out,), jnp.float32),
        "neck1_w": 0.1 * jax.random.normal(ks[6], (c_out, c2, 1, 1), jnp.float32),
        "neck1_b": 0.01 * jax.random.normal(ks[7], (c_out,), jnp.float32),
    }


# ----------------------------------------------------------------------------
# Synthetic Far3D img-backbone forward (same structure as the reference:
# grid_mask -> img_backbone -> img_neck -> per-level (B, N, C, H, W) views).
# ----------------------------------------------------------------------------
def far3d_export_img_backbone_forward(img, weights, *, c_out=32,
                                      backbone_channels=(8, 16),
                                      use_grid_mask=True, with_img_neck=True,
                                      position_level=(0, 1), B=1):
    BN, _, H, Wd = img.shape
    # Single layout change at the external (NCHW) boundary; NHWC inside.
    x = jnp.transpose(img, (0, 2, 3, 1)).astype(jnp.float32)
    if use_grid_mask:
        # grid-mask multiply fused into the conv1 input glue (no extra kernel).
        x = x * make_grid_mask(H, Wd)[None, :, :, None]
    x = x.astype(jnp.bfloat16)

    # Stage 1: conv1 (3x3 s2 + ReLU) fused with the level-0 1x1 neck conv.
    a1, Ho1, Wo1 = _im2col_3x3_s2(x)
    k1_pad = weights["conv1"][0].shape[0]
    if a1.shape[-1] != k1_pad:
        a1 = jnp.pad(a1, ((0, 0), (0, 0), (0, k1_pad - a1.shape[-1])))
    f1, n0 = fused_conv_neck(a1, *weights["conv1"], *weights["neck0"])

    # Stage 2: conv2 on the bf16, 128-padded-channel f1, fused with neck 1.
    f1_nhwc = f1.reshape(BN, Ho1, Wo1, f1.shape[-1])
    a2, Ho2, Wo2 = _im2col_3x3_s2(f1_nhwc)
    f2, n1 = fused_conv_neck(a2, *weights["conv2"], *weights["neck1"])

    if with_img_neck:
        # Kernel already wrote channel-major f32: reshape is free, slice the
        # real channels once at the very end.
        levels = [n0.reshape(BN, CN_PAD, Ho1, Wo1)[:, :c_out],
                  n1.reshape(BN, CN_PAD, Ho2, Wo2)[:, :c_out]]
    else:
        c1, c2 = backbone_channels
        f2_nhwc = f2.reshape(BN, Ho2, Wo2, f2.shape[-1])
        levels = [
            jnp.transpose(f1_nhwc[..., :c1], (0, 3, 1, 2)).astype(jnp.float32),
            jnp.transpose(f2_nhwc[..., :c2], (0, 3, 1, 2)).astype(jnp.float32),
        ]

    outs = []
    for i in position_level:
        BN_, C_, H_, W_ = levels[i].shape
        outs.append(levels[i].reshape(B, BN_ // B, C_, H_, W_))
    return outs


if __name__ == "__main__":
    key = jax.random.PRNGKey(0)
    k_img, k_par = jax.random.split(key)

    # B=1 sample, N=2 cameras -> BN=2; 4 input channels; 16x16 images.
    img = jax.random.normal(k_img, (2, 4, 16, 16), dtype=jnp.float32)
    params = init_params(k_par)
    weights = prepare_weights(params, c_in=4)   # once, outside per-frame path

    fwd = jax.jit(functools.partial(
        far3d_export_img_backbone_forward, c_out=32, backbone_channels=(8, 16),
        use_grid_mask=True, with_img_neck=True, position_level=(0, 1), B=1))
    outs = fwd(img, weights)
    for o in outs:
        jax.block_until_ready(o)

    # Shapes implied by the reference forward.
    assert outs[0].shape == (1, 2, 32, 8, 8), outs[0].shape
    assert outs[1].shape == (1, 2, 32, 4, 4), outs[1].shape
    print("KERNEL_OK")
</pallas_src>

<mosaic_0001>
module attributes {stable_mosaic.version = 11 : i64} {
  func.func @_fused_conv_neck_kernel(%arg0: i32, %arg1: i32, %arg2: memref<1x64x128xbf16, #tpu.memory_space<vmem>>, %arg3: memref<128x128xbf16, #tpu.memory_space<vmem>>, %arg4: memref<1x128xf32, #tpu.memory_space<vmem>>, %arg5: memref<128x128xbf16, #tpu.memory_space<vmem>>, %arg6: memref<128x1xf32, #tpu.memory_space<vmem>>, %arg7: memref<1x64x128xbf16, #tpu.memory_space<vmem>>, %arg8: memref<1x128x64xf32, #tpu.memory_space<vmem>>) attributes {dimension_semantics = [#tpu.dimension_semantics<parallel>, #tpu.dimension_semantics<parallel>], iteration_bounds = array<i64: 2, 1>, scalar_prefetch = 0 : i64, scratch_operands = 0 : i64, tpu.core_type = #tpu.core_type<tc>, window_params = [{transform_indices = @transform_0, window_bounds = array<i64: 1, 64, 128>}, {pipeline_mode = #tpu.pipeline_mode<synchronous>, transform_indices = @transform_1, window_bounds = array<i64: 128, 128>}, {pipeline_mode = #tpu.pipeline_mode<synchronous>, transform_indices = @transform_2, window_bounds = array<i64: 1, 128>}, {pipeline_mode = #tpu.pipeline_mode<synchronous>, transform_indices = @transform_3, window_bounds = array<i64: 128, 128>}, {pipeline_mode = #tpu.pipeline_mode<synchronous>, transform_indices = @transform_4, window_bounds = array<i64: 128, 1>}, {transform_indices = @transform_5, window_bounds = array<i64: 1, 64, 128>}, {transform_indices = @transform_6, window_bounds = array<i64: 1, 128, 64>}]} {
    %c0 = arith.constant 0 : index
    %c0_0 = arith.constant 0 : index
    %c0_1 = arith.constant 0 : index
    %0 = vector.load %arg2[%c0, %c0_0, %c0_1] : memref<1x64x128xbf16, #tpu.memory_space<vmem>>, vector<1x64x128xbf16>
    %1 = vector.shape_cast %0 : vector<1x64x128xbf16> to vector<64x128xbf16>
    %c0_2 = arith.constant 0 : index
    %c0_3 = arith.constant 0 : index
    %2 = vector.load %arg3[%c0_2, %c0_3] : memref<128x128xbf16, #tpu.memory_space<vmem>>, vector<128x128xbf16>
    %cst = arith.constant dense<0.000000e+00> : vector<64x128xf32>
    %3 = tpu.matmul %1, %2, %cst {dimension_numbers = #tpu.dot_dimension_numbers<[1], [0], [0], [1], [0, 0, 1, 1], [], []>} : vector<64x128xbf16>, vector<128x128xbf16>, vector<64x128xf32> -> vector<64x128xf32>
    %c0_4 = arith.constant 0 : index
    %c0_5 = arith.constant 0 : index
    %4 = vector.load %arg4[%c0_4, %c0_5] : memref<1x128xf32, #tpu.memory_space<vmem>>, vector<1x128xf32>
    %5 = vector.broadcast %4 : vector<1x128xf32> to vector<64x128xf32>
    %6 = arith.addf %3, %5 : vector<64x128xf32>
    %cst_6 = arith.constant 0.000000e+00 : f32
    %7 = vector.broadcast %cst_6 : f32 to vector<64x128xf32>
    %8 = arith.maximumf %6, %7 : vector<64x128xf32>
    %9 = arith.truncf %8 : vector<64x128xf32> to vector<64x128xbf16>
    %c0_7 = arith.constant 0 : index
    %c0_8 = arith.constant 0 : index
    %c0_9 = arith.constant 0 : index
    %10 = vector.load %arg7[%c0_7, %c0_8, %c0_9] : memref<1x64x128xbf16, #tpu.memory_space<vmem>>, vector<1x64x128xbf16>
    %11 = vector.shape_cast %10 : vector<1x64x128xbf16> to vector<64x128xbf16>
    %12 = vector.shape_cast %9 : vector<64x128xbf16> to vector<1x64x128xbf16>
    tpu.vector_store %arg7[%c0_7, %c0_8, %c0_9], %12 {strides = array<i32>} : memref<1x64x128xbf16, #tpu.memory_space<vmem>>, vector<1x64x128xbf16>,
    %c0_10 = arith.constant 0 : index
    %c0_11 = arith.constant 0 : index
    %13 = vector.load %arg5[%c0_10, %c0_11] : memref<128x128xbf16, #tpu.memory_space<vmem>>, vector<128x128xbf16>
    %cst_12 = arith.constant dense<0.000000e+00> : vector<128x64xf32>
    %14 = tpu.matmul %13, %9, %cst_12 {dimension_numbers = #tpu.dot_dimension_numbers<[1], [1], [0], [0], [0, 0, 1, 0], [], []>} : vector<128x128xbf16>, vector<64x128xbf16>, vector<128x64xf32> -> vector<128x64xf32>
    %c0_13 = arith.constant 0 : index
    %c0_14 = arith.constant 0 : index
    %15 = vector.load %arg6[%c0_13, %c0_14] : memref<128x1xf32, #tpu.memory_space<vmem>>, vector<128x1xf32>
    %16 = vector.broadcast %15 : vector<128x1xf32> to vector<128x64xf32>
    %17 = arith.addf %14, %16 : vector<128x64xf32>
    %c0_15 = arith.constant 0 : index
    %c0_16 = arith.constant 0 : index
    %c0_17 = arith.constant 0 : index
    %18 = vector.load %arg8[%c0_15, %c0_16, %c0_17] : memref<1x128x64xf32, #tpu.memory_space<vmem>>, vector<1x128x64xf32>
    %19 = vector.shape_cast %18 : vector<1x128x64xf32> to vector<128x64xf32>
    %20 = vector.shape_cast %17 : vector<128x64xf32> to vector<1x128x64xf32>
    tpu.vector_store %arg8[%c0_15, %c0_16, %c0_17], %20 {strides = array<i32>} : memref<1x128x64xf32, #tpu.memory_space<vmem>>, vector<1x128x64xf32>,
    return
  }
  func.func @transform_0(%arg0: i32, %arg1: i32) -> (i32, i32, i32) {
    %c0_i32 = arith.constant 0 : i32
    %c0_i32_0 = arith.constant 0 : i32
    return %arg0, %arg1, %c0_i32 : i32, i32, i32
  }
  func.func @transform_1(%arg0: i32, %arg1: i32) -> (i32, i32) {
    %c0_i32 = arith.constant 0 : i32
    %c0_i32_0 = arith.constant 0 : i32
    %c0_i32_1 = arith.constant 0 : i32
    return %c0_i32, %c0_i32_0 : i32, i32
  }
  func.func @transform_2(%arg0: i32, %arg1: i32) -> (i32, i32) {
    %c0_i32 = arith.constant 0 : i32
    %c0_i32_0 = arith.constant 0 : i32
    %c0_i32_1 = arith.constant 0 : i32
    return %c0_i32, %c0_i32_0 : i32, i32
  }
  func.func @transform_3(%arg0: i32, %arg1: i32) -> (i32, i32) {
    %c0_i32 = arith.constant 0 : i32
    %c0_i32_0 = arith.constant 0 : i32
    %c0_i32_1 = arith.constant 0 : i32
    return %c0_i32, %c0_i32_0 : i32, i32
  }
  func.func @transform_4(%arg0: i32, %arg1: i32) -> (i32, i32) {
    %c0_i32 = arith.constant 0 : i32
    %c0_i32_0 = arith.constant 0 : i32
    %c0_i32_1 = arith.constant 0 : i32
    return %c0_i32, %c0_i32_0 : i32, i32
  }
  func.func @transform_5(%arg0: i32, %arg1: i32) -> (i32, i32, i32) {
    %c0_i32 = arith.constant 0 : i32
    %c0_i32_0 = arith.constant 0 : i32
    return %arg0, %arg1, %c0_i32 : i32, i32, i32
  }
  func.func @transform_6(%arg0: i32, %arg1: i32) -> (i32, i32, i32) {
    %c0_i32 = arith.constant 0 : i32
    %c0_i32_0 = arith.constant 0 : i32
    return %arg0, %c0_i32, %arg1 : i32, i32, i32
  }
}

module attributes {stable_mosaic.version = 11 : i64} {
  func.func @_fused_conv_neck_kernel(%arg0: i32, %arg1: i32, %arg2: memref<1x16x1152xbf16, #tpu.memory_space<vmem>>, %arg3: memref<1152x128xbf16, #tpu.memory_space<vmem>>, %arg4: memref<1x128xf32, #tpu.memory_space<vmem>>, %arg5: memref<128x128xbf16, #tpu.memory_space<vmem>>, %arg6: memref<128x1xf32, #tpu.memory_space<vmem>>, %arg7: memref<1x16x128xbf16, #tpu.memory_space<vmem>>, %arg8: memref<1x128x16xf32, #tpu.memory_space<vmem>>) attributes {dimension_semantics = [#tpu.dimension_semantics<parallel>, #tpu.dimension_semantics<parallel>], iteration_bounds = array<i64: 2, 1>, scalar_prefetch = 0 : i64, scratch_operands = 0 : i64, tpu.core_type = #tpu.core_type<tc>, window_params = [{transform_indices = @transform_0, window_bounds = array<i64: 1, 16, 1152>}, {pipeline_mode = #tpu.pipeline_mode<synchronous>, transform_indices = @transform_1, window_bounds = array<i64: 1152, 128>}, {pipeline_mode = #tpu.pipeline_mode<synchronous>, transform_indices = @transform_2, window_bounds = array<i64: 1, 128>}, {pipeline_mode = #tpu.pipeline_mode<synchronous>, transform_indices = @transform_3, window_bounds = array<i64: 128, 128>}, {pipeline_mode = #tpu.pipeline_mode<synchronous>, transform_indices = @transform_4, window_bounds = array<i64: 128, 1>}, {transform_indices = @transform_5, window_bounds = array<i64: 1, 16, 128>}, {transform_indices = @transform_6, window_bounds = array<i64: 1, 128, 16>}]} {
    %c0 = arith.constant 0 : index
    %c0_0 = arith.constant 0 : index
    %c0_1 = arith.constant 0 : index
    %0 = vector.load %arg2[%c0, %c0_0, %c0_1] : memref<1x16x1152xbf16, #tpu.memory_space<vmem>>, vector<1x16x1152xbf16>
    %1 = vector.shape_cast %0 : vector<1x16x1152xbf16> to vector<16x1152xbf16>
    %c0_2 = arith.constant 0 : index
    %c0_3 = arith.constant 0 : index
    %2 = vector.load %arg3[%c0_2, %c0_3] : memref<1152x128xbf16, #tpu.memory_space<vmem>>, vector<1152x128xbf16>
    %cst = arith.constant dense<0.000000e+00> : vector<16x128xf32>
    %3 = tpu.matmul %1, %2, %cst {dimension_numbers = #tpu.dot_dimension_numbers<[1], [0], [0], [1], [0, 0, 1, 1], [], []>} : vector<16x1152xbf16>, vector<1152x128xbf16>, vector<16x128xf32> -> vector<16x128xf32>
    %c0_4 = arith.constant 0 : index
    %c0_5 = arith.constant 0 : index
    %4 = vector.load %arg4[%c0_4, %c0_5] : memref<1x128xf32, #tpu.memory_space<vmem>>, vector<1x128xf32>
    %5 = vector.broadcast %4 : vector<1x128xf32> to vector<16x128xf32>
    %6 = arith.addf %3, %5 : vector<16x128xf32>
    %cst_6 = arith.constant 0.000000e+00 : f32
    %7 = vector.broadcast %cst_6 : f32 to vector<16x128xf32>
    %8 = arith.maximumf %6, %7 : vector<16x128xf32>
    %9 = arith.truncf %8 : vector<16x128xf32> to vector<16x128xbf16>
    %c0_7 = arith.constant 0 : index
    %c0_8 = arith.constant 0 : index
    %c0_9 = arith.constant 0 : index
    %10 = vector.load %arg7[%c0_7, %c0_8, %c0_9] : memref<1x16x128xbf16, #tpu.memory_space<vmem>>, vector<1x16x128xbf16>
    %11 = vector.shape_cast %10 : vector<1x16x128xbf16> to vector<16x128xbf16>
    %12 = vector.shape_cast %9 : vector<16x128xbf16> to vector<1x16x128xbf16>
    tpu.vector_store %arg7[%c0_7, %c0_8, %c0_9], %12 {strides = array<i32>} : memref<1x16x128xbf16, #tpu.memory_space<vmem>>, vector<1x16x128xbf16>,
    %c0_10 = arith.constant 0 : index
    %c0_11 = arith.constant 0 : index
    %13 = vector.load %arg5[%c0_10, %c0_11] : memref<128x128xbf16, #tpu.memory_space<vmem>>, vector<128x128xbf16>
    %cst_12 = arith.constant dense<0.000000e+00> : vector<128x16xf32>
    %14 = tpu.matmul %13, %9, %cst_12 {dimension_numbers = #tpu.dot_dimension_numbers<[1], [1], [0], [0], [0, 0, 1, 0], [], []>} : vector<128x128xbf16>, vector<16x128xbf16>, vector<128x16xf32> -> vector<128x16xf32>
    %c0_13 = arith.constant 0 : index
    %c0_14 = arith.constant 0 : index
    %15 = vector.load %arg6[%c0_13, %c0_14] : memref<128x1xf32, #tpu.memory_space<vmem>>, vector<128x1xf32>
    %16 = vector.broadcast %15 : vector<128x1xf32> to vector<128x16xf32>
    %17 = arith.addf %14, %16 : vector<128x16xf32>
    %c0_15 = arith.constant 0 : index
    %c0_16 = arith.constant 0 : index
    %c0_17 = arith.constant 0 : index
    %18 = vector.load %arg8[%c0_15, %c0_16, %c0_17] : memref<1x128x16xf32, #tpu.memory_space<vmem>>, vector<1x128x16xf32>
    %19 = vector.shape_cast %18 : vector<1x128x16xf32> to vector<128x16xf32>
    %20 = vector.shape_cast %17 : vector<128x16xf32> to vector<1x128x16xf32>
    tpu.vector_store %arg8[%c0_15, %c0_16, %c0_17], %20 {strides = array<i32>} : memref<1x128x16xf32, #tpu.memory_space<vmem>>, vector<1x128x16xf32>,
    return
  }
  func.func @transform_0(%arg0: i32, %arg1: i32) -> (i32, i32, i32) {
    %c0_i32 = arith.constant 0 : i32
    %c0_i32_0 = arith.constant 0 : i32
    return %arg0, %arg1, %c0_i32 : i32, i32, i32
  }
  func.func @transform_1(%arg0: i32, %arg1: i32) -> (i32, i32) {
    %c0_i32 = arith.constant 0 : i32
    %c0_i32_0 = arith.constant 0 : i32
    %c0_i32_1 = arith.constant 0 : i32
    return %c0_i32, %c0_i32_0 : i32, i32
  }
  func.func @transform_2(%arg0: i32, %arg1: i32) -> (i32, i32) {
    %c0_i32 = arith.constant 0 : i32
    %c0_i32_0 = arith.constant 0 : i32
    %c0_i32_1 = arith.constant 0 : i32
    return %c0_i32, %c0_i32_0 : i32, i32
  }
  func.func @transform_3(%arg0: i32, %arg1: i32) -> (i32, i32) {
    %c0_i32 = arith.constant 0 : i32
    %c0_i32_0 = arith.constant 0 : i32
    %c0_i32_1 = arith.constant 0 : i32
    return %c0_i32, %c0_i32_0 : i32, i32
  }
  func.func @transform_4(%arg0: i32, %arg1: i32) -> (i32, i32) {
    %c0_i32 = arith.constant 0 : i32
    %c0_i32_0 = arith.constant 0 : i32
    %c0_i32_1 = arith.constant 0 : i32
    return %c0_i32, %c0_i32_0 : i32, i32
  }
  func.func @transform_5(%arg0: i32, %arg1: i32) -> (i32, i32, i32) {
    %c0_i32 = arith.constant 0 : i32
    %c0_i32_0 = arith.constant 0 : i32
    return %arg0, %arg1, %c0_i32 : i32, i32, i32
  }
  func.func @transform_6(%arg0: i32, %arg1: i32) -> (i32, i32, i32) {
    %c0_i32 = arith.constant 0 : i32
    %c0_i32_0 = arith.constant 0 : i32
    return %arg0, %c0_i32, %arg1 : i32, i32, i32
  }
}

</mosaic_0001>

<bundles_post_ra>
// kernel: far3d_export_img_backbone_forward.2
= control target key start
LH: loop header
LB: loop body
LE: loop exit
PB: predicated region body
PF: predicated region fallthrough
CT: control target
= control target key end

     0   :  { %s1192_s21 = smov 0   ;;  %s1194_s22 = smov 0   ;;  %s1369_s0 = inlined_call_operand.vmem [shape: bf16[2,64,128], index: 0, kind: input, shape index: {}]   ;;  %s1370_s1 = inlined_call_operand.vmem [shape: bf16[128,128], index: 1, kind: input, shape index: {}]   ;;  %s1371_s2 = inlined_call_operand.vmem [shape: f32[1,128], index: 2, kind: input, shape index: {}]   ;;  %s1372_s3 = inlined_call_operand.vmem [shape: bf16[128,128], index: 3, kind: input, shape index: {}]   ;;  %s1373_s4 = inlined_call_operand.vmem [shape: f32[128,1], index: 4, kind: input, shape index: {}]   ;;  %s1374_s5 = inlined_call_operand.vmem [shape: bf16[2,64,128], index: 5, kind: output, shape index: {0}]   ;;  %s1375_s6 = inlined_call_operand.vmem [shape: f32[2,128,64], index: 6, kind: output, shape index: {1}]  }
   0x1   :  { %s1196_s23 = smov 0  }
   0x2 LB: > { %s29_s24 = sadd.s32 1, %s1150_s22  ;;  %p941_p0 = scmp.ge.s32.totalorder %s1154_s23, 1  ;;  %s1154_s23 = sphi %s1196_s23, %s17_s23   ;;  %s1150_s22 = sphi %s1194_s22, %s1377_s22   ;;  %s1146_s21 = sphi %s1192_s21, %s1376_s21  }
   0x3   : > { %p31_p1 = scmp.ge.s32.totalorder %s29_s24, 2  ;;  %p238_p2 = scmp.lt.s32.totalorder %s1154_s23, 3 }
   0x5   : > { %s1379_s24 = smov (%p31_p1, %s29_s24), 0  ;;  %p239_p3 = pnand %p941_p0, %p238_p2 }
   0x6   : > { %v1112_v0 = vld [vmem:[%s1370_s1] sm:$0xff] (!%p239_p3)   ;;  %p285_p4 = scmp.lt.s32.totalorder (!%p239_p3), %s1146_s21, 1  ;;  %v1113_v1 = vld [vmem:[%s1370_s1 + $0x8] sm:$0xff] (!%p239_p3)   ;;  %v1114_v2 = vld [vmem:[%s1370_s1 + $0x10] sm:$0xff] (!%p239_p3)   ;;  %v1156_v15 = vmov (!%p239_p3), 0   ;;  %vm786_vm0 = vcmask (!%p239_p3), 523264  }
   0x7   : > { %242 = sbr.rel (%p239_p3) target bundleno = 534 (0x216), region = 40  ;;  %1037 = vmatprep.subr.bf16.mxu0 (!%p239_p3), %v1112_v0  ;;  %v1115_v3 = vld [vmem:[%s1370_s1 + $0x18] sm:$0xff] (!%p239_p3)   ;;  %v1116_v5 = vld [vmem:[%s1370_s1 + $0x20] sm:$0xff] (!%p239_p3)   ;;  %v1117_v6 = vld [vmem:[%s1370_s1 + $0x28] sm:$0xff] (!%p239_p3)   ;;  %1111 = vset.pattern.permute.xlu1 (!%p239_p3), %v1156_v15 }
   0x8   : > { %1038 = vmatpush3.bf16.msra.mxu0 (!%p239_p3), %v1112_v0  ;;  %v1118_v7 = vld [vmem:[%s1370_s1 + $0x30] sm:$0xff] (!%p239_p3)   ;;  %v1119_v8 = vld [vmem:[%s1370_s1 + $0x38] sm:$0xff] (!%p239_p3)   ;;  %v1124_v12 = vld [vmem:[%s1372_s3] sm:$0xff] (!%p239_p3)   ;;  %1110 = vset.pattern.permute.xlu0 (!%p239_p3), %v1156_v15 }
   0x9   : > { %1039 = vmatprep.subr.bf16.mxu0 (!%p239_p3), %v1113_v1  ;;  %1069 = vmatprep.mubr.bf16.mxu1 (!%p239_p3), %v1124_v12  ;;  %v547_v13 = vld [vmem:[%s1373_s4 + $0x10] sm:$0xff] (!%p239_p3)  ;;  %v545_v14 = vld [vmem:[%s1373_s4] sm:$0xff] (!%p239_p3)  ;;  %v548_v16 = vld [vmem:[%s1373_s4 + $0x18] sm:$0xff] (!%p239_p3) }
   0xa   : > { %573 = vperm.xlu1 (!%p239_p3), %1111, %v547_v13   ;;  %563 = vperm.xlu0 (!%p239_p3), %1110, %v545_v14   ;;  %v546_v17 = vld [vmem:[%s1373_s4 + $0x8] sm:$0xff] (!%p239_p3)  ;;  %v549_v19 = vld [vmem:[%s1373_s4 + $0x20] sm:$0xff] (!%p239_p3)  ;;  %v552_v20 = vld [vmem:[%s1373_s4 + $0x38] sm:$0xff] (!%p239_p3) }
   0xb   : > { %v550_v18 = vld [vmem:[%s1373_s4 + $0x28] sm:$0xff] (!%p239_p3)  ;;  %v551_v21 = vld [vmem:[%s1373_s4 + $0x30] sm:$0xff] (!%p239_p3)  ;;  %v553_v23 = vld [vmem:[%s1373_s4 + $0x40] sm:$0xff] (!%p239_p3) }
   0xc   : > { %1040 = vmatpush3.bf16.msra.mxu0 (!%p239_p3), %v1113_v1  ;;  %v554_v22 = vld [vmem:[%s1373_s4 + $0x48] sm:$0xff] (!%p239_p3)  ;;  %v556_v24 = vld [vmem:[%s1373_s4 + $0x58] sm:$0xff] (!%p239_p3)  ;;  %v555_v25 = vld [vmem:[%s1373_s4 + $0x50] sm:$0xff] (!%p239_p3) }
   0xd   : > { %1041 = vmatprep.subr.bf16.mxu0 (!%p239_p3), %v1114_v2  ;;  %v558_v26 = vld [vmem:[%s1373_s4 + $0x68] sm:$0xff] (!%p239_p3)  ;;  %v557_v27 = vld [vmem:[%s1373_s4 + $0x60] sm:$0xff] (!%p239_p3)  ;;  %v560_v28 = vld [vmem:[%s1373_s4 + $0x78] sm:$0xff] (!%p239_p3) }
   0xe   : > { %s1381_s21 = smov (!%p285_p4, %s1146_s21), 1  ;;  %578 = vperm.xlu1 %1111, %v548_v16   ;;  %568 = vperm.xlu0 %1110, %v546_v17   ;;  %v559_v29 = vld [vmem:[%s1373_s4 + $0x70] sm:$0xff]  ;;  %v948_v30 = vld [vmem:[%s1371_s2] ss:$0 sm:$0xff]  ;;  %v1125_v59 = vld [vmem:[%s1372_s3 + $0x8] sm:$0xff]  }
   0xf   : > { %s979_s7 = sshll.u32 %s1381_s21, 5  ;;  %v1126_v60 = vld [vmem:[%s1372_s3 + $0x10] sm:$0xff]   ;;  %v1127_v61 = vld [vmem:[%s1372_s3 + $0x18] sm:$0xff]   ;;  %v1128_v62 = vld [vmem:[%s1372_s3 + $0x20] sm:$0xff]   ;;  %s981_s16 = sshll.u32 %s1381_s21, 7 }
  0x10   : > { %s292_s10 = scalar_lea.vmem %s1369_s0, %s979_s7  ;;  %1042 = vmatpush3.bf16.msra.mxu0 %v1114_v2  ;;  %s302_s25 = scalar_lea.vmem %s1374_s5, %s979_s7  ;;  %v1129_v63 = vld [vmem:[%s1372_s3 + $0x28] sm:$0xff]   ;;  %v1130_v0 = vld [vmem:[%s1372_s3 + $0x30] sm:$0xff]   ;;  %v1131_v1 = vld [vmem:[%s1372_s3 + $0x38] sm:$0xff]  }
  0x11   : > { %v1120_v4 = vld [vmem:[%s292_s10] sm:$0xff]   ;;  %1043 = vmatprep.subr.bf16.mxu0 %v1115_v3  ;;  %v1121_v9 = vld [vmem:[%s292_s10 + $0x8] sm:$0xff]   ;;  %v1122_v10 = vld [vmem:[%s292_s10 + $0x10] sm:$0xff]   ;;  %s1326_s19 = scalar_lea.vmem %s1375_s6, %s981_s16 }
  0x12   : > { %1053 = vmatprep.mubr.bf16.mxu0 %v1120_v4  ;;  %v1123_v11 = vld [vmem:[%s292_s10 + $0x18] sm:$0xff]   ;;  %588 = vperm.xlu1 %1111, %v550_v18  }
  0x13   : > { %583 = vperm.xlu0 %1110, %v549_v19  }
  0x14   : > { %1044 = vmatpush3.bf16.msra.mxu0 %v1115_v3 }
  0x15   : > { %1045 = vmatprep.subr.bf16.mxu0 %v1116_v5 }
  0x16   : > { %598 = vperm.xlu1 %1111, %v552_v20  }
  0x17   : > { %593 = vperm.xlu0 %1110, %v551_v21  }
  0x18   : > { %1046 = vmatpush3.bf16.msra.mxu0 %v1116_v5 }
  0x19   : > { %1047 = vmatprep.subr.bf16.mxu0 %v1117_v6 }
  0x1a   : > { %608 = vperm.xlu1 %1111, %v554_v22  }
  0x1b   : > { %603 = vperm.xlu0 %1110, %v553_v23  }
  0x1c   : > { %1048 = vmatpush3.bf16.msra.mxu0 %v1117_v6 }
  0x1d   : > { %1049 = vmatprep.subr.bf16.mxu0 %v1118_v7 }
  0x1e   : > { %618 = vperm.xlu1 %1111, %v556_v24  }
  0x1f   : > { %613 = vperm.xlu0 %1110, %v555_v25  }
  0x20   : > { %1050 = vmatpush3.bf16.msra.mxu0 %v1118_v7 }
  0x21   : > { %1051 = vmatprep.subr.bf16.mxu0 %v1119_v8 }
  0x22   : > { %628 = vperm.xlu1 %1111, %v558_v26  }
  0x23   : > { %623 = vperm.xlu0 %1110, %v557_v27  }
  0x24   : > { %1052 = vmatpush3.bf16.msra.mxu0 %v1119_v8 }
  0x26   : > { %638 = vperm.xlu1 %1111, %v560_v28  }
  0x27   : > { %1054 = vmatmul.mubr.bf16.vlgmr.msra.gmra.mrb[0].mxu0 %v1121_v9  ;;  %633 = vperm.xlu0 %1110, %v559_v29  }
  0x28   : > { %1057 = vmatprep.mubr.bf16.mxu0 %v1122_v10 }
  0x2f   : > { %1058 = vmatmul.mubr.bf16.gmra.mrb[4].mxu0 %v1123_v11 }
  0x89   : > { %v564_v2 = vpop.permute.xlu0 %563  ;;  %v574_v3 = vpop.permute.xlu1 %573 }
  0x8d   : > { %v569_v4 = vpop.permute.xlu0 %568  ;;  %v579_v5 = vpop.permute.xlu1 %578 }
  0x91   : > { %v589_v7 = vpop.permute.xlu1 %588 }
  0x92   : > { %v584_v6 = vpop.permute.xlu0 %583 }
  0x95   : > { %v599_v12 = vpop.permute.xlu1 %598 }
  0x96   : > { %v594_v8 = vpop.permute.xlu0 %593 }
  0x99   : > { %v609_v19 = vpop.permute.xlu1 %608 }
  0x9a   : > { %v604_v18 = vpop.permute.xlu0 %603 }
  0x9d   : > { %v619_v29 = vpop.permute.xlu1 %618 }
  0x9e   : > { %v614_v27 = vpop.permute.xlu0 %613 }
  0xfa   : > { %v1055_v31 = vpop.f32.mrb[0].mxu0 }
  0xfb   : > { %v459_v32 = vadd.f32 %v1055_v31, %v948_v30  ;;  %v450_v33 = vpop.f32.mrb[1].mxu0 }
  0xfc   : > { %v451_v34 = vadd.f32 %v948_v30, %v450_v33  ;;  %v1056_v35 = vpop.f32.mrb[2].mxu0  ;;  %v624_v33 = vpop.permute.xlu0 %623 }
  0xfd   : > { %v462_v36 = vadd.f32 %v1056_v35, %v948_v30  ;;  %v453_v37 = vpop.f32.mrb[3].mxu0  ;;  %v483_v39 = vmax.f32 %v459_v32, 0.0 }
  0xfe   : > { %v454_v38 = vadd.f32 %v948_v30, %v453_v37  ;;  %v481_v41 = vmax.f32 %v451_v34, 0.0 }
  0xff   : > { %v484_v40 = vmax.f32 %v462_v36, 0.0 }
 0x100   : > { %v482_v42 = vmax.f32 %v454_v38, 0.0  ;;  %v629_v38 = vpop.permute.xlu1 %628 }
 0x101   : > { %v490_v43 = vpack.c.bf16 %v484_v40, %v483_v39  ;;  %v634_v40 = vpop.permute.xlu0 %633 }
 0x102   : > { %v489_v44 = vpack.c.bf16 %v482_v42, %v481_v41  ;;  %v1059_v45 = vpop.f32.mrb[4].mxu0 }
 0x103   : > { %1010 = vst [vmem:[%s302_s25 + $0x8] sm:$0xff] %v490_v43   ;;  %v475_v46 = vadd.f32 %v1059_v45, %v948_v30  ;;  %v466_v47 = vpop.f32.mrb[5].mxu0 }
 0x104   : > { %994 = vst [vmem:[%s302_s25] sm:$0xff] %v489_v44   ;;  %1061 = vmatprep.subr.bf16.mxu1 %v489_v44  ;;  %v467_v48 = vadd.f32 %v948_v30, %v466_v47  ;;  %v1060_v49 = vpop.f32.mrb[6].mxu0 }
 0x105   : > { %1062 = vmatpush3.bf16.xpose.msra.mxu1 %v489_v44  ;;  %v487_v50 = vmax.f32 %v475_v46, 0.0  ;;  %v478_v51 = vadd.f32 %v1060_v49, %v948_v30  ;;  %v469_v52 = vpop.f32.mrb[7].mxu0  ;;  %v639_v44 = vpop.permute.xlu1 %638 }
 0x106   : > { %1063 = vmatprep.subr.bf16.mxu1 %v490_v43  ;;  %v485_v53 = vmax.f32 %v467_v48, 0.0  ;;  %v470_v54 = vadd.f32 %v948_v30, %v469_v52 }
 0x107   : > { %v488_v55 = vmax.f32 %v478_v51, 0.0 }
 0x108   : > { %v486_v56 = vmax.f32 %v470_v54, 0.0 }
 0x109   : > { %v492_v57 = vpack.c.bf16 %v488_v55, %v487_v50 }
 0x10a   : > { %v491_v58 = vpack.c.bf16 %v486_v56, %v485_v53 }
 0x10b   : > { %1012 = vst [vmem:[%s302_s25 + $0x18] sm:$0xff] %v492_v57  }
 0x10c   : > { %1011 = vst [vmem:[%s302_s25 + $0x10] sm:$0xff] %v491_v58  }
 0x10d   : > { %1064 = vmatpush3.bf16.xpose.msra.mxu1 %v490_v43 }
 0x10e   : > { %1065 = vmatprep.subr.bf16.mxu1 %v491_v58 }
 0x115   : > { %1066 = vmatpush3.bf16.xpose.msra.mxu1 %v491_v58 }
 0x116   : > { %1067 = vmatprep.subr.bf16.mxu1 %v492_v57 }
 0x11d   : > { %1068 = vmatpush3.bf16.xpose.msra.mxu1 %v492_v57 }
 0x124   : > { %1070 = vmatmul.mubr.bf16.vlgmr.msra.gmra.mrb[0].mxu1 %v1125_v59 }
 0x125   : > { %1073 = vmatprep.mubr.bf16.mxu1 %v1126_v60 }
 0x12c   : > { %1074 = vmatmul.mubr.bf16.gmra.mrb[4].mxu1 %v1127_v61 }
 0x12d   : > { %1077 = vmatprep.mubr.bf16.mxu1 %v1128_v62 }
 0x134   : > { %1078 = vmatmul.mubr.bf16.gmra.mrb[8].mxu1 %v1129_v63 }
 0x135   : > { %1081 = vmatprep.mubr.bf16.mxu1 %v1130_v0 }
 0x13c   : > { %1082 = vmatmul.mubr.bf16.gmra.mrb[12].mxu1 %v1131_v1 }
 0x1f7   : > { %v1071_v9 = vpop.f32.mrb[0].mxu1 }
 0x1f8   : > { %v732_v10 = vadd.f32 %v1071_v9, %v574_v3  ;;  %v723_v11 = vpop.f32.mrb[1].mxu1 }
 0x1f9   : > { %v724_v13 = vadd.f32 %v723_v11, %v564_v2  ;;  %v1072_v14 = vpop.f32.mrb[2].mxu1 }
 0x1fa   : > { %789 = vst.msk [vmem:[%s1326_s19 + $0x10] sm:$0xff] %vm786_vm0, %v732_v10  ;;  %v735_v15 = vadd.f32 %v1072_v14, %v579_v5  ;;  %v726_v16 = vpop.f32.mrb[3].mxu1 }
 0x1fb   : > { %787 = vst.msk [vmem:[%s1326_s19] sm:$0xff] %vm786_vm0, %v724_v13  ;;  %v727_v17 = vadd.f32 %v726_v16, %v569_v4 }
 0x1fc   : > { %790 = vst.msk [vmem:[%s1326_s19 + $0x18] sm:$0xff] %vm786_vm0, %v735_v15 }
 0x1fd   : > { %788 = vst.msk [vmem:[%s1326_s19 + $0x8] sm:$0xff] %vm786_vm0, %v727_v17 }
 0x1ff   : > { %v1075_v20 = vpop.f32.mrb[4].mxu1 }
 0x200   : > { %v748_v21 = vadd.f32 %v1075_v20, %v594_v8  ;;  %v739_v22 = vpop.f32.mrb[5].mxu1 }
 0x201   : > { %v740_v23 = vadd.f32 %v739_v22, %v584_v6  ;;  %v1076_v24 = vpop.f32.mrb[6].mxu1 }
 0x202   : > { %793 = vst.msk [vmem:[%s1326_s19 + $0x30] sm:$0xff] %vm786_vm0, %v748_v21  ;;  %v751_v25 = vadd.f32 %v1076_v24, %v599_v12  ;;  %v742_v26 = vpop.f32.mrb[7].mxu1 }
 0x203   : > { %791 = vst.msk [vmem:[%s1326_s19 + $0x20] sm:$0xff] %vm786_vm0, %v740_v23  ;;  %v743_v28 = vadd.f32 %v742_v26, %v589_v7 }
 0x204   : > { %794 = vst.msk [vmem:[%s1326_s19 + $0x38] sm:$0xff] %vm786_vm0, %v751_v25 }
 0x205   : > { %792 = vst.msk [vmem:[%s1326_s19 + $0x28] sm:$0xff] %vm786_vm0, %v743_v28 }
 0x207   : > { %v1079_v30 = vpop.f32.mrb[8].mxu1 }
 0x208   : > { %v764_v31 = vadd.f32 %v1079_v30, %v614_v27  ;;  %v755_v32 = vpop.f32.mrb[9].mxu1 }
 0x209   : > { %v756_v34 = vadd.f32 %v755_v32, %v604_v18  ;;  %v1080_v35 = vpop.f32.mrb[10].mxu1 }
 0x20a   : > { %797 = vst.msk [vmem:[%s1326_s19 + $0x50] sm:$0xff] %vm786_vm0, %v764_v31  ;;  %v767_v36 = vadd.f32 %v1080_v35, %v619_v29  ;;  %v758_v37 = vpop.f32.mrb[11].mxu1 }
 0x20b   : > { %795 = vst.msk [vmem:[%s1326_s19 + $0x40] sm:$0xff] %vm786_vm0, %v756_v34  ;;  %v759_v39 = vadd.f32 %v758_v37, %v609_v19 }
 0x20c   : > { %798 = vst.msk [vmem:[%s1326_s19 + $0x58] sm:$0xff] %vm786_vm0, %v767_v36 }
 0x20d   : > { %796 = vst.msk [vmem:[%s1326_s19 + $0x48] sm:$0xff] %vm786_vm0, %v759_v39 }
 0x20f   : > { %v1083_v41 = vpop.f32.mrb[12].mxu1 }
 0x210   : > { %v780_v42 = vadd.f32 %v1083_v41, %v634_v40  ;;  %v771_v43 = vpop.f32.mrb[13].mxu1 }
 0x211   : > { %v772_v45 = vadd.f32 %v771_v43, %v624_v33  ;;  %v1084_v46 = vpop.f32.mrb[14].mxu1 }
 0x212   : > { %801 = vst.msk [vmem:[%s1326_s19 + $0x70] sm:$0xff] %vm786_vm0, %v780_v42  ;;  %v783_v47 = vadd.f32 %v1084_v46, %v639_v44  ;;  %v774_v48 = vpop.f32.mrb[15].mxu1 }
 0x213   : > { %799 = vst.msk [vmem:[%s1326_s19 + $0x60] sm:$0xff] %vm786_vm0, %v772_v45  ;;  %v775_v49 = vadd.f32 %v774_v48, %v629_v38 }
 0x214   : > { %802 = vst.msk [vmem:[%s1326_s19 + $0x78] sm:$0xff] %vm786_vm0, %v783_v47 }
 0x215   : > { %800 = vst.msk [vmem:[%s1326_s19 + $0x68] sm:$0xff] %vm786_vm0, %v775_v49 }
 0x216 PF: > { %s17_s23 = sadd.s32 1, %s1154_s23   ;;  %s1376_s21 = smov %s1150_s22 }
 0x217   : > { %p14_p5 = scmp.ge.s32.totalorder %s17_s23, 4   ;;  %s1377_s22 = smov %s1379_s24 }
 0x219   :  { %16 = sbr.rel (!%p14_p5) target bundleno = 2 (0x2), region = 82 }

// kernel: far3d_export_img_backbone_forward.3
= control target key start
LH: loop header
LB: loop body
LE: loop exit
PB: predicated region body
PF: predicated region fallthrough
CT: control target
= control target key end

     0   :  { %12 = vsyncpa [#allocation3], 0  ;;  %s2579_s0 = inlined_call_operand.vmem [shape: bf16[2,16,1152], index: 0, kind: input, shape index: {}]   ;;  %s2580_s1 = inlined_call_operand.vmem [shape: bf16[1152,128], index: 1, kind: input, shape index: {}]   ;;  %s2581_s2 = inlined_call_operand.vmem [shape: f32[1,128], index: 2, kind: input, shape index: {}]   ;;  %s2582_s3 = inlined_call_operand.vmem [shape: bf16[128,128], index: 3, kind: input, shape index: {}]   ;;  %s2583_s4 = inlined_call_operand.vmem [shape: f32[128,1], index: 4, kind: input, shape index: {}]   ;;  %s2584_s5 = inlined_call_operand.hbm [shape: bf16[2,16,128], index: 5, kind: output, shape index: {0}]   ;;  %s2585_s6 = inlined_call_operand.vmem [shape: f32[2,128,16], index: 6, kind: output, shape index: {1}]  }
   0x1   :  { %14 = vsyncpa [#allocation3 + $0x1], 0  ;;  %s2117_s21 = smov 0   ;;  %s2119_s22 = smov 0  }
   0x2   :  { %s2121_s23 = smov 0   ;;  %s2123_s24 = smov 0  }
   0x3   :  { %s2125_s25 = smov 0   ;;  %s2127_s26 = smov 0  }
   0x4 LB: > { %s1581_s27 = sadd.s32 4294967295, %s2074_s26   ;;  %s1582_s28 = sadd.s32 4294967294, %s2074_s26   ;;  %s2074_s26 = sphi %s2127_s26, %s20_s26   ;;  %s2070_s25 = sphi %s2125_s25, %s2592_s25   ;;  %s2066_s24 = sphi %s2123_s24, %s2591_s24   ;;  %s2062_s23 = sphi %s2121_s23, %s2590_s23   ;;  %s2058_s22 = sphi %s2119_s22, %s2589_s22   ;;  %s2054_s21 = sphi %s2117_s21, %s2588_s21  }
   0x5   : > { %s32_s29 = sadd.s32 1, %s2070_s25  ;;  %s153_s30 = sadd.s32 1, %s2062_s23 }
   0x6   : > { %p34_p0 = scmp.ge.s32.totalorder %s32_s29, 2  ;;  %p163_p1 = scmp.ne.s32.totalorder %s2062_s23, %s2058_s22 }
   0x7   : > { %p164_p2 = scmp.eq.s32.totalorder %s1581_s27, 1  ;;  %p169_p3 = scmp.ne.s32.totalorder %s2058_s22, %s2054_s21 }
   0x8   : > { %s2594_s29 = smov (%p34_p0, %s32_s29), 0  ;;  %p170_p5 = scmp.eq.s32.totalorder %s1582_s28, 1 }
   0x9   : > { %p2157_p4 = por %p164_p2, %p163_p1  ;;  %s148_s8 = ssub.s32 %s2070_s25, %s2594_s29 }
   0xa   : > { %p1585_p6 = scmp.ge.s32.totalorder %s2074_s26, 1  ;;  %p151_p7 = scmp.eq.s32.totalorder %s148_s8, 0 }
   0xb   : > { %p2164_p8 = por %p170_p5, %p169_p3  ;;  %p242_p9 = scmp.lt.s32.totalorder %s2074_s26, 3 }
   0xc   : > { %s2170_s10 = scalar_select %p151_p7, %s2062_s23, %s153_s30  }
   0xd   : > { %p243_p10 = pnand %p1585_p6, %p242_p9 }
   0xe   : > { %v1903_v0 = vld [vmem:[%s2580_s1 + $0x40] sm:$0xff] (!%p243_p10)   ;;  %v1907_v4 = vld [vmem:[%s2580_s1 + $0x48] sm:$0xff] (!%p243_p10)   ;;  %v1911_v8 = vld [vmem:[%s2580_s1 + $0x50] sm:$0xff] (!%p243_p10)   ;;  %p286_p11 = scmp.lt.s32.totalorder (!%p243_p10), %s2066_s24, 1  ;;  %vm2077_vm0 = vmmov (!%p243_p10), 0   ;;  %s272_s17 = sand.u32 (!%p243_p10), 1, %s2058_s22  }
   0xf   : > { %246 = sbr.rel (%p243_p10) target bundleno = 581 (0x245), region = 40  ;;  %v1904_v1 = vld [vmem:[%s2580_s1] sm:$0xff] (!%p243_p10)   ;;  %1696 = vmatprep.subr.bf16.mxu0 (!%p243_p10), %v1903_v0  ;;  %v1908_v5 = vld [vmem:[%s2580_s1 + $0x8] sm:$0xff] (!%p243_p10)   ;;  %v1912_v9 = vld [vmem:[%s2580_s1 + $0x10] sm:$0xff] (!%p243_p10)   ;;  %s1586_s19 = sshll.u32 (!%p243_p10), %s272_s17, 3 }
  0x10   : > { %v1905_v2 = vld [vmem:[%s2580_s1 + $0xc0] sm:$0xff] (!%p243_p10)   ;;  %1697 = vmatpush3.bf16.msra.mxu0 (!%p243_p10), %v1904_v1  ;;  %v1909_v6 = vld [vmem:[%s2580_s1 + $0xc8] sm:$0xff] (!%p243_p10)   ;;  %v1913_v10 = vld [vmem:[%s2580_s1 + $0xd0] sm:$0xff] (!%p243_p10)   ;;  %s274_s27 = scalar_lea.vmem (!%p243_p10), [#allocation2], %s1586_s19  ;;  %s1690_s8 = sshll.u32 (!%p243_p10), %s2066_s24, 7 }
  0x11   : > { %v1906_v3 = vld [vmem:[%s2580_s1 + $0x80] sm:$0xff] (!%p243_p10)   ;;  %1718 = vmatprep.subr.bf16.mxu1 (!%p243_p10), %v1905_v2  ;;  %1698 = vmatprep.subr.bf16.mxu0 (!%p243_p10), %v1907_v4  ;;  %v1910_v7 = vld [vmem:[%s2580_s1 + $0x88] sm:$0xff] (!%p243_p10)   ;;  %v1914_v11 = vld [vmem:[%s2580_s1 + $0x90] sm:$0xff] (!%p243_p10)   ;;  %s1460_s12 = sshll.u32 (!%p243_p10), %s274_s27, 4  ;;  %s2489_s14 = scalar_lea.hbm (!%p243_p10), %s2584_s5, %s1690_s8  ;;  %s2491_s12 = int_to_ptr.vmem [resolvable:$true] %s1460_s12 }
  0x12   : > { %1719 = vmatpush3.bf16.msra.mxu1 (!%p243_p10), %v1906_v3  ;;  %v1915_v12 = vld [vmem:[%s2580_s1 + $0x58] sm:$0xff] (!%p243_p10)   ;;  %v1919_v16 = vld [vmem:[%s2580_s1 + $0x60] sm:$0xff] (!%p243_p10)   ;;  %v1923_v20 = vld [vmem:[%s2580_s1 + $0x68] sm:$0xff] (!%p243_p10)   ;;  %s2495_s15 = scalar_lea.sflag (!%p243_p10), [#allocation3], %s272_s17  ;;  %s1996_s16 = scalar_lea.vmem (!%p243_p10), %s2491_s12, 128 }
  0x13   : > { %1720 = vmatprep.subr.bf16.mxu1 (!%p243_p10), %v1909_v6  ;;  %v1916_v13 = vld [vmem:[%s2580_s1 + $0x18] sm:$0xff] (!%p243_p10)   ;;  %v1920_v17 = vld [vmem:[%s2580_s1 + $0x20] sm:$0xff] (!%p243_p10)   ;;  %v1924_v21 = vld [vmem:[%s2580_s1 + $0x28] sm:$0xff] (!%p243_p10)   ;;  %v2076_v6 = vmov (!%p243_p10), 0.0   ;;  %p1997_p12 = scmp.ne.s32.totalorder (!%p243_p10), %s2491_s12, %s1996_s16 }
  0x14   : > { %1699 = vmatpush3.bf16.msra.mxu0 (!%p243_p10), %v1908_v5  ;;  %v1917_v14 = vld [vmem:[%s2580_s1 + $0xd8] sm:$0xff] (!%p243_p10)   ;;  %v1921_v18 = vld [vmem:[%s2580_s1 + $0xe0] sm:$0xff] (!%p243_p10)   ;;  %v1925_v22 = vld [vmem:[%s2580_s1 + $0xe8] sm:$0xff] (!%p243_p10)  }
  0x15   : > { %1700 = vmatprep.subr.bf16.mxu0 (!%p243_p10), %v1911_v8  ;;  %v1918_v15 = vld [vmem:[%s2580_s1 + $0x98] sm:$0xff] (!%p243_p10)   ;;  %v1922_v19 = vld [vmem:[%s2580_s1 + $0xa0] sm:$0xff] (!%p243_p10)   ;;  %v1926_v23 = vld [vmem:[%s2580_s1 + $0xa8] sm:$0xff] (!%p243_p10)   ;;  %p1998_p13 = pnand (!%p243_p10), %p1997_p12, %p2157_p4 }
  0x16   : > { %1721 = vmatpush3.bf16.msra.mxu1 %v1910_v7  ;;  %s2237_s11 = scalar_select %p286_p11, %s2066_s24, 1  ;;  %v1927_v24 = vld [vmem:[%s2580_s1 + $0x70] sm:$0xff]   ;;  %v1931_v28 = vld [vmem:[%s2580_s1 + $0x78] sm:$0xff]   ;;  %v1938_v34 = vld [vmem:[%s2580_s1 + $0x140] sm:$0xff]  }
  0x17   : > { %1722 = vmatprep.subr.bf16.mxu1 %v1913_v10  ;;  %v1928_v25 = vld [vmem:[%s2580_s1 + $0x30] sm:$0xff]   ;;  %v1932_v29 = vld [vmem:[%s2580_s1 + $0x38] sm:$0xff]   ;;  %v1942_v37 = vld [vmem:[%s2580_s1 + $0x100] sm:$0xff]   ;;  %p1999_p0 = pneg %p1998_p13  ;;  %s2079_s24 = smov [#allocation2]  }
  0x18   : > { %1701 = vmatpush3.bf16.msra.mxu0 %v1912_v9  ;;  %s1840_s20 = smul.u32 72, %s2237_s11  ;;  %v1929_v26 = vld [vmem:[%s2580_s1 + $0xf0] sm:$0xff]   ;;  %v1933_v30 = vld [vmem:[%s2580_s1 + $0xf8] sm:$0xff]   ;;  %v1943_v38 = vld [vmem:[%s2580_s1 + $0x1c0] sm:$0xff]  }
  0x19   : > { %1702 = vmatprep.subr.bf16.mxu0 %v1915_v12  ;;  %v1930_v27 = vld [vmem:[%s2580_s1 + $0xb0] sm:$0xff]   ;;  %v1937_v33 = vld [vmem:[%s2580_s1 + $0xb8] sm:$0xff]   ;;  %v1944_v39 = vld [vmem:[%s2580_s1 + $0x180] sm:$0xff]  }
  0x1a   : > { %1723 = vmatpush3.bf16.msra.mxu1 %v1914_v11  ;;  %s2267_s18 = scalar_lea.vmem %s2579_s0, %s1840_s20  ;;  %v1945_v40 = vld [vmem:[%s2580_s1 + $0x148] sm:$0xff]   ;;  %v1949_v44 = vld [vmem:[%s2580_s1 + $0x150] sm:$0xff]   ;;  %v1953_v48 = vld [vmem:[%s2580_s1 + $0x158] sm:$0xff]  }
  0x1b   : > { %1724 = vmatprep.subr.bf16.mxu1 %v1917_v14  ;;  %v1934_v31 = vld [vmem:[%s2267_s18] ss:$36 sps:$4 sm:$0xff]   ;;  %v1939_v35 = vld [vmem:[%s2267_s18 + $0x8] ss:$36 sps:$4 sm:$0xff]   ;;  %v1950_v45 = vld [vmem:[%s2580_s1 + $0x110] sm:$0xff]  }
  0x1c   : > { %1703 = vmatpush3.bf16.msra.mxu0 %v1916_v13  ;;  %v1936_v32 = vld [vmem:[%s2267_s18 + $0x4] ss:$36 sps:$4 sm:$0xff]   ;;  %v1941_v36 = vld [vmem:[%s2267_s18 + $0xc] ss:$36 sps:$4 sm:$0xff]   ;;  %v1954_v49 = vld [vmem:[%s2580_s1 + $0x118] sm:$0xff]  }
  0x1d   : > { %1704 = vmatprep.subr.bf16.mxu0 %v1919_v16  ;;  %977 = vmatprep.mubr.bf16.mxu0 %v1936_v32  ;;  %v1946_v41 = vld [vmem:[%s2580_s1 + $0x108] sm:$0xff]   ;;  %v1951_v46 = vld [vmem:[%s2580_s1 + $0x1d0] sm:$0xff]   ;;  %v1955_v50 = vld [vmem:[%s2580_s1 + $0x1d8] sm:$0xff]  }
  0x1e   : > { %1725 = vmatpush3.bf16.msra.mxu1 %v1918_v15  ;;  %1018 = vmatprep.mubr.bf16.mxu1 %v1941_v36  ;;  %v1947_v42 = vld [vmem:[%s2580_s1 + $0x1c8] sm:$0xff]   ;;  %v1952_v47 = vld [vmem:[%s2580_s1 + $0x190] sm:$0xff]   ;;  %v1956_v51 = vld [vmem:[%s2580_s1 + $0x198] sm:$0xff]  }
  0x1f   : > { %1726 = vmatprep.subr.bf16.mxu1 %v1921_v18  ;;  %v1948_v43 = vld [vmem:[%s2580_s1 + $0x188] sm:$0xff]   ;;  %v1957_v52 = vld [vmem:[%s2580_s1 + $0x160] sm:$0xff]   ;;  %v1965_v60 = vld [vmem:[%s2580_s1 + $0x170] sm:$0xff]  }
  0x20   : > { %1705 = vmatpush3.bf16.msra.mxu0 %v1920_v17  ;;  %v1958_v53 = vld [vmem:[%s2580_s1 + $0x120] sm:$0xff]   ;;  %v1961_v56 = vld [vmem:[%s2580_s1 + $0x168] sm:$0xff]   ;;  %v1966_v61 = vld [vmem:[%s2580_s1 + $0x130] sm:$0xff]  }
  0x21   : > { %1706 = vmatprep.subr.bf16.mxu0 %v1923_v20  ;;  %v1959_v54 = vld [vmem:[%s2580_s1 + $0x1e0] sm:$0xff]   ;;  %v1962_v57 = vld [vmem:[%s2580_s1 + $0x128] sm:$0xff]   ;;  %v1967_v62 = vld [vmem:[%s2580_s1 + $0x1f0] sm:$0xff]  }
  0x22   : > { %1727 = vmatpush3.bf16.msra.mxu1 %v1922_v19  ;;  %v1960_v55 = vld [vmem:[%s2580_s1 + $0x1a0] sm:$0xff]   ;;  %v1963_v58 = vld [vmem:[%s2580_s1 + $0x1e8] sm:$0xff]   ;;  %v1968_v63 = vld [vmem:[%s2580_s1 + $0x1b0] sm:$0xff]  }
  0x23   : > { %1728 = vmatprep.subr.bf16.mxu1 %v1925_v22  ;;  %v1964_v59 = vld [vmem:[%s2580_s1 + $0x1a8] sm:$0xff]   ;;  %v1969_v0 = vld [vmem:[%s2580_s1 + $0x178] sm:$0xff]   ;;  %v1972_v3 = vld [vmem:[%s2267_s18 + $0x10] ss:$36 sps:$4 sm:$0xff]  }
  0x24   : > { %1707 = vmatpush3.bf16.msra.mxu0 %v1924_v21  ;;  %v1970_v1 = vld [vmem:[%s2580_s1 + $0x138] sm:$0xff]   ;;  %v1979_v9 = vld [vmem:[%s2580_s1 + $0x200] sm:$0xff]   ;;  %v1980_v10 = vld [vmem:[%s2580_s1 + $0x208] sm:$0xff]   ;;  %v2078_v21 = vmov 0  }
  0x25   : > { %1708 = vmatprep.subr.bf16.mxu0 %v1927_v24  ;;  %v1971_v2 = vld [vmem:[%s2580_s1 + $0x1f8] sm:$0xff]   ;;  %v1981_v11 = vld [vmem:[%s2580_s1 + $0x210] sm:$0xff]   ;;  %v1983_v13 = vld [vmem:[%s2580_s1 + $0x220] sm:$0xff]   ;;  %1902 = vset.pattern.permute.xlu1 %v2078_v21 }
  0x26   : > { %1729 = vmatpush3.bf16.msra.mxu1 %v1926_v23  ;;  %v1974_v4 = vld [vmem:[%s2267_s18 + $0x14] ss:$36 sps:$4 sm:$0xff]   ;;  %v1978_v8 = vld [vmem:[%s2267_s18 + $0x1c] ss:$36 sps:$4 sm:$0xff]   ;;  %v1984_v14 = vld [vmem:[%s2580_s1 + $0x228] sm:$0xff]   ;;  %1901 = vset.pattern.permute.xlu0 %v2078_v21 }
  0x27   : > { %1730 = vmatprep.subr.bf16.mxu1 %v1929_v26  ;;  %v1975_v5 = vld [vmem:[%s2580_s1 + $0x1b8] sm:$0xff]   ;;  %v1985_v15 = vld [vmem:[%s2580_s1 + $0x230] sm:$0xff]   ;;  %v1987_v17 = vld [vmem:[%s2267_s18 + $0x20] ss:$36 sps:$4 sm:$0xff]  }
  0x28   : > { %1709 = vmatpush3.bf16.msra.mxu0 %v1928_v25  ;;  %v1976_v7 = vld [vmem:[%s2267_s18 + $0x18] ss:$36 sps:$4 sm:$0xff]   ;;  %v1988_v18 = vld [vmem:[%s2582_s3] sm:$0xff]   ;;  %v1180_v19 = vld [vmem:[%s2583_s4 + $0x10] sm:$0xff] }
  0x29   : > { %1710 = vmatprep.subr.bf16.mxu0 %v1931_v28  ;;  %v1982_v12 = vld [vmem:[%s2580_s1 + $0x218] sm:$0xff]   ;;  %v1178_v20 = vld [vmem:[%s2583_s4] sm:$0xff]  ;;  %1206 = vperm.xlu1 %1902, %v1180_v19   ;;  %v1179_v23 = vld [vmem:[%s2583_s4 + $0x8] sm:$0xff] }
  0x2a   : > { %1731 = vmatpush3.bf16.msra.mxu1 %v1930_v27  ;;  %v1986_v16 = vld [vmem:[%s2580_s1 + $0x238] sm:$0xff]   ;;  %1196 = vperm.xlu0 %1901, %v1178_v20   ;;  %v1183_v24 = vld [vmem:[%s2583_s4 + $0x28] sm:$0xff]  ;;  %v1182_v25 = vld [vmem:[%s2583_s4 + $0x20] sm:$0xff] }
  0x2b   : > { %1732 = vmatprep.subr.bf16.mxu1 %v1933_v30  ;;  %v1181_v22 = vld [vmem:[%s2583_s4 + $0x18] sm:$0xff]  ;;  %v1184_v27 = vld [vmem:[%s2583_s4 + $0x30] sm:$0xff]  ;;  %v1187_v28 = vld [vmem:[%s2583_s4 + $0x48] sm:$0xff] }
  0x2c   : > { %1711 = vmatpush3.bf16.msra.mxu0 %v1932_v29  ;;  %v1185_v26 = vld [vmem:[%s2583_s4 + $0x38] sm:$0xff]  ;;  %v1186_v29 = vld [vmem:[%s2583_s4 + $0x40] sm:$0xff]  ;;  %v1188_v32 = vld [vmem:[%s2583_s4 + $0x50] sm:$0xff] }
  0x2d   : > { %1740 = vmatprep.subr.bf16.mxu0 %v1938_v34  ;;  %1211 = vperm.xlu1 %1902, %v1181_v22   ;;  %v1994_v19 = vld [vmem:[%s2582_s3 + $0x30] sm:$0xff]   ;;  %v1995_v20 = vld [vmem:[%s2582_s3 + $0x38] sm:$0xff]  }
  0x2e   : > { %1733 = vmatpush3.bf16.msra.mxu1 %v1937_v33  ;;  %1201 = vperm.xlu0 %1901, %v1179_v23   ;;  %v1590_v33 = vld [vmem:[%s2581_s2] ss:$0 sm:$0xff] }
  0x2f   : > { %978 = vmatmul.mubr.bf16.vlgmr.msra.gmra.mrb[0].mxu0 %v1934_v31  ;;  %1762 = vmatprep.subr.bf16.mxu1 %v1943_v38  ;;  %v1189_v31 = vld [vmem:[%s2583_s4 + $0x58] sm:$0xff] }
  0x30   : > { %1741 = vmatpush3.bf16.msra.mxu0 %v1942_v37  ;;  %1059 = vmatprep.mubr.bf16.mxu0 %v1974_v4 }
  0x31   : > { %1019 = vmatmul.mubr.bf16.vlgmr.msra.gmra.mrb[0].mxu1 %v1939_v35  ;;  %1742 = vmatprep.subr.bf16.mxu0 %v1945_v40 }
  0x32   : > { %1763 = vmatpush3.bf16.msra.mxu1 %v1944_v39  ;;  %1100 = vmatprep.mubr.bf16.mxu1 %v1978_v8 }
  0x33   : > { %1764 = vmatprep.subr.bf16.mxu1 %v1947_v42  ;;  %1221 = vperm.xlu1 %1902, %v1183_v24   ;;  %v1191_v42 = vld [vmem:[%s2583_s4 + $0x68] sm:$0xff] }
  0x34   : > { %1743 = vmatpush3.bf16.msra.mxu0 %v1946_v41  ;;  %1216 = vperm.xlu0 %1901, %v1182_v25  }
  0x35   : > { %1744 = vmatprep.subr.bf16.mxu0 %v1949_v44 }
  0x36   : > { %1765 = vmatpush3.bf16.msra.mxu1 %v1948_v43  ;;  %v1190_v43 = vld [vmem:[%s2583_s4 + $0x60] sm:$0xff] }
  0x37   : > { %1766 = vmatprep.subr.bf16.mxu1 %v1951_v46  ;;  %1231 = vperm.xlu1 %1902, %v1185_v26  }
  0x38   : > { %1745 = vmatpush3.bf16.msra.mxu0 %v1950_v45  ;;  %1226 = vperm.xlu0 %1901, %v1184_v27  }
  0x39   : > { %1746 = vmatprep.subr.bf16.mxu0 %v1953_v48 }
  0x3a   : > { %1767 = vmatpush3.bf16.msra.mxu1 %v1952_v47 }
  0x3b   : > { %1768 = vmatprep.subr.bf16.mxu1 %v1955_v50  ;;  %1241 = vperm.xlu1 %1902, %v1187_v28   ;;  %v1193_v50 = vld [vmem:[%s2583_s4 + $0x78] sm:$0xff] }
  0x3c   : > { %1747 = vmatpush3.bf16.msra.mxu0 %v1954_v49  ;;  %1236 = vperm.xlu0 %1901, %v1186_v29  }
  0x3d   : > { %1748 = vmatprep.subr.bf16.mxu0 %v1957_v52 }
  0x3e   : > { %1769 = vmatpush3.bf16.msra.mxu1 %v1956_v51  ;;  %v1192_v51 = vld [vmem:[%s2583_s4 + $0x70] sm:$0xff] }
  0x3f   : > { %1770 = vmatprep.subr.bf16.mxu1 %v1959_v54  ;;  %1251 = vperm.xlu1 %1902, %v1189_v31  }
  0x40   : > { %1749 = vmatpush3.bf16.msra.mxu0 %v1958_v53  ;;  %1246 = vperm.xlu0 %1901, %v1188_v32  }
  0x41   : > { %1750 = vmatprep.subr.bf16.mxu0 %v1961_v56 }
  0x42   : > { %1771 = vmatpush3.bf16.msra.mxu1 %v1960_v55 }
  0x43   : > { %1772 = vmatprep.subr.bf16.mxu1 %v1963_v58  ;;  %1261 = vperm.xlu1 %1902, %v1191_v42  }
  0x44   : > { %1751 = vmatpush3.bf16.msra.mxu0 %v1962_v57  ;;  %1256 = vperm.xlu0 %1901, %v1190_v43  }
  0x45   : > { %1752 = vmatprep.subr.bf16.mxu0 %v1965_v60 }
  0x46   : > { %1773 = vmatpush3.bf16.msra.mxu1 %v1964_v59 }
  0x47   : > { %1774 = vmatprep.subr.bf16.mxu1 %v1967_v62  ;;  %1271 = vperm.xlu1 %1902, %v1193_v50  }
  0x48   : > { %1753 = vmatpush3.bf16.msra.mxu0 %v1966_v61  ;;  %1266 = vperm.xlu0 %1901, %v1192_v51  }
  0x49   : > { %1754 = vmatprep.subr.bf16.mxu0 %v1969_v0 }
  0x4a   : > { %1775 = vmatpush3.bf16.msra.mxu1 %v1968_v63 }
  0x4b   : > { %1776 = vmatprep.subr.bf16.mxu1 %v1971_v2 }
  0x4c   : > { %1755 = vmatpush3.bf16.msra.mxu0 %v1970_v1 }
  0x4d   : > { %1802 = vmatprep.subr.bf16.mxu0 %v2076_v6 }
  0x4e   : > { %1777 = vmatpush3.bf16.msra.mxu1 %v1975_v5 }
  0x4f   : > { %1060 = vmatmul.mubr.bf16.vlgmr.msra.gmra.mrb[4].mxu0 %v1972_v3 }
  0x50   : > { %1818 = vmatprep.mubr.msk.bf16.mxu0 %vm2077_vm0, %v2076_v6  ;;  %1803 = vmatpush3.bf16.msra.mxu0 %v1979_v9 }
  0x51   : > { %1101 = vmatmul.mubr.bf16.vlgmr.msra.gmra.mrb[4].mxu1 %v1976_v7  ;;  %1804 = vmatprep.subr.bf16.mxu0 %v2076_v6 }
  0x52   : > { %1824 = vmatprep.mubr.bf16.mxu1 %v1988_v18  ;;  %v1993_v18 = vld [vmem:[%s2582_s3 + $0x28] sm:$0xff]  }
  0x54   : > { %1805 = vmatpush3.bf16.msra.mxu0 %v1980_v10 }
  0x55   : > { %1806 = vmatprep.subr.bf16.mxu0 %v2076_v6 }
  0x58   : > { %1807 = vmatpush3.bf16.msra.mxu0 %v1981_v11 }
  0x59   : > { %1808 = vmatprep.subr.bf16.mxu0 %v2076_v6 }
  0x5c   : > { %1809 = vmatpush3.bf16.msra.mxu0 %v1982_v12 }
  0x5d   : > { %1810 = vmatprep.subr.bf16.mxu0 %v2076_v6 }
  0x60   : > { %1811 = vmatpush3.bf16.msra.mxu0 %v1983_v13 }
  0x61   : > { %1812 = vmatprep.subr.bf16.mxu0 %v2076_v6 }
  0x64   : > { %1813 = vmatpush3.bf16.msra.mxu0 %v1984_v14  ;;  %v1989_v14 = vld [vmem:[%s2582_s3 + $0x8] sm:$0xff]  }
  0x65   : > { %1814 = vmatprep.subr.bf16.mxu0 %v2076_v6 }
  0x68   : > { %1815 = vmatpush3.bf16.msra.mxu0 %v1985_v15  ;;  %v1990_v15 = vld [vmem:[%s2582_s3 + $0x10] sm:$0xff]  }
  0x69   : > { %1816 = vmatprep.subr.bf16.mxu0 %v2076_v6 }
  0x6c   : > { %1817 = vmatpush3.bf16.msra.mxu0 %v1986_v16  ;;  %v1991_v16 = vld [vmem:[%s2582_s3 + $0x18] sm:$0xff]  }
  0x6f   : > { %1819 = vmatmul.mubr.bf16.vlgmr.msra.gmra.mrb[8].mxu0 %v1987_v17  ;;  %v1992_v17 = vld [vmem:[%s2582_s3 + $0x20] sm:$0xff]  }
 0x102   : > { %v1712_v30 = vpop.f32.mrb[0].mxu0 }
 0x103   : > { %v1713_v34 = vpop.f32.mrb[1].mxu0 }
 0x104   : > { %v1714_v35 = vadd.f32 %v1713_v34, %v1712_v30  ;;  %v1715_v36 = vpop.f32.mrb[2].mxu0  ;;  %v1734_v37 = vpop.f32.mrb[0].mxu1 }
 0x105   : > { %v1716_v38 = vpop.f32.mrb[3].mxu0  ;;  %v1735_v41 = vpop.f32.mrb[1].mxu1 }
 0x106   : > { %v980_v39 = vadd.f32 %v1714_v35, %v1590_v33  ;;  %v1717_v40 = vadd.f32 %v1716_v38, %v1715_v36  ;;  %v1736_v44 = vadd.f32 %v1735_v41, %v1734_v37  ;;  %v1737_v45 = vpop.f32.mrb[2].mxu1 }
 0x107   : > { %v1738_v47 = vpop.f32.mrb[3].mxu1 }
 0x108   : > { %v983_v46 = vadd.f32 %v1717_v40, %v1590_v33  ;;  %v1021_v48 = vadd.f32 %v1736_v44, %v980_v39  ;;  %v1739_v49 = vadd.f32 %v1738_v47, %v1737_v45 }
 0x10a   : > { %v1024_v52 = vadd.f32 %v1739_v49, %v983_v46 }
 0x122   : > { %v1756_v53 = vpop.f32.mrb[4].mxu0 }
 0x123   : > { %v1757_v54 = vpop.f32.mrb[5].mxu0 }
 0x124   : > { %v1758_v55 = vadd.f32 %v1757_v54, %v1756_v53  ;;  %v1759_v56 = vpop.f32.mrb[6].mxu0  ;;  %v1778_v57 = vpop.f32.mrb[4].mxu1 }
 0x125   : > { %v1760_v58 = vpop.f32.mrb[7].mxu0  ;;  %v1779_v61 = vpop.f32.mrb[5].mxu1 }
 0x126   : > { %v1062_v59 = vadd.f32 %v1758_v55, %v1021_v48  ;;  %v1761_v60 = vadd.f32 %v1760_v58, %v1759_v56  ;;  %v1780_v62 = vadd.f32 %v1779_v61, %v1778_v57  ;;  %v1781_v63 = vpop.f32.mrb[6].mxu1 }
 0x127   : > { %v1782_v1 = vpop.f32.mrb[7].mxu1 }
 0x128   : > { %v1065_v0 = vadd.f32 %v1761_v60, %v1024_v52  ;;  %v1783_v2 = vadd.f32 %v1782_v1, %v1781_v63  ;;  %v1103_v3 = vadd.f32 %v1780_v62, %v1062_v59 }
 0x12a   : > { %v1106_v4 = vadd.f32 %v1783_v2, %v1065_v0 }
 0x142   : > { %v1143_v5 = vpop.f32.mrb[8].mxu0 }
 0x143   : > { %v1144_v6 = vadd.f32 %v1143_v5, %v1103_v3  ;;  %v1820_v7 = vpop.f32.mrb[9].mxu0 }
 0x144   : > { %v1146_v8 = vpop.f32.mrb[10].mxu0 }
 0x145   : > { %v1147_v9 = vadd.f32 %v1146_v8, %v1106_v4  ;;  %v1821_v10 = vpop.f32.mrb[11].mxu0  ;;  %v1150_v11 = vmax.f32 %v1144_v6, 0.0 }
 0x147   : > { %v1151_v12 = vmax.f32 %v1147_v9, 0.0 }
 0x149   : > { %v1152_v13 = vpack.c.bf16 %v1151_v12, %v1150_v11 }
 0x14b   : > { %1695 = vst [vmem:[%s274_s27] sm:$0xff] %v1152_v13   ;;  %1822 = vmatprep.subr.bf16.mxu1 %v1152_v13  ;;  %s2000_s27 = sshll.u32 %s2079_s24, 4  ;;  %s2001_s27 = int_to_ptr.vmem [resolvable:$false] %s2000_s27 }
 0x14c   : > { %1823 = vmatpush3.bf16.xpose.msra.mxu1 %v1152_v13  ;;  %s2002_s19 = scalar_lea.vmem %s2001_s27, 256  ;;  %p2003_p1 = scmp.lt.s32.totalorder %s2491_s12, %s2001_s27 }
 0x14d   : > { %p2004_p2 = scmp.lt.s32.totalorder %s2002_s19, %s1996_s16 }
 0x14f   : > { %p2005_p3 = por %p2004_p2, %p2003_p1 }
 0x151   : > { %p2006_p5 = pnand %p2005_p3, %p1999_p0 }
 0x153   : > { %1825 = vmatmul.mubr.bf16.vlgmr.msra.gmra.mrb[8].mxu1 %v1989_v14 }
 0x154   : > { %1828 = vmatprep.mubr.bf16.mxu1 %v1990_v15 }
 0x15b   : > { %1829 = vmatmul.mubr.bf16.gmra.mrb[12].mxu1 %v1991_v16 }
 0x15c   : > { %1832 = vmatprep.mubr.bf16.mxu1 %v1992_v17 }
 0x163   : > { %1833 = vmatmul.mubr.bf16.gmra.mrb[16].mxu1 %v1993_v18 }
 0x164   : > { %1836 = vmatprep.mubr.bf16.mxu1 %v1994_v19 }
 0x16b   : > { %1837 = vmatmul.mubr.bf16.gmra.mrb[20].mxu1 %v1995_v20 }
 0x16c   : > { %2009 = shalt.err (!%p2006_p5)
}
 0x16d   : > { %s2010_s17 = scalar_lea.hbm %s2489_s14, 128  ;;  %s2014_s20 = scalar_lea.hbm %s2584_s5, 256 }
 0x16e   : > { %p2011_p6 = scmp.ne.s32.totalorder %s2489_s14, %s2010_s17  ;;  %p2015_p10 = scmp.lt.u32.totalorder %s2489_s14, %s2584_s5 }
 0x16f   : > { %p2016_p11 = scmp.lt.u32.totalorder %s2014_s20, %s2010_s17  ;;  %p2018_p13 = scmp.lt.u32.totalorder %s2010_s17, %s2489_s14 }
 0x170   : > { %p2012_p7 = pnand %p2011_p6, %p2157_p4 }
 0x171   : > { %p2017_p12 = por %p2016_p11, %p2015_p10 }
 0x172   : > { %p2013_p9 = pneg %p2012_p7 }
 0x173   : > { %p2019_p0 = por %p2018_p13, %p2017_p12 }
 0x175   : > { %p2020_p1 = pnand %p2019_p0, %p2013_p9 }
 0x177   : > { %2023 = shalt.err (!%p2020_p1)
}
 0x178   : > { %s2080_s18 = smov 64   ;;  %s2081_s16 = smov 4   ;;  %v1197_v21 = vpop.permute.xlu0 %1196  ;;  %v1207_v22 = vpop.permute.xlu1 %1206  ;;  %vm1419_vm1 = vcmask 130048  }
 0x179   : > { %1841 = dma.vmem_to_hbm [thread:$0]  (%p2157_p4), %s2491_s12, 128, %s2489_s14, %s2495_s15, %s2080_s18, %s2080_s18, %s2081_s16  }
 0x17a   : > { %s1687_s24 = sshll.u32 %s2237_s11, 7 }
 0x17b   : > { %s2523_s17 = scalar_lea.vmem %s2585_s6, %s1687_s24 }
 0x17c   : > { %v1202_v23 = vpop.permute.xlu0 %1201  ;;  %v1212_v24 = vpop.permute.xlu1 %1211 }
 0x180   : > { %v1217_v25 = vpop.permute.xlu0 %1216  ;;  %v1222_v26 = vpop.permute.xlu1 %1221 }
 0x184   : > { %v1227_v27 = vpop.permute.xlu0 %1226  ;;  %v1232_v31 = vpop.permute.xlu1 %1231 }
 0x188   : > { %v1237_v37 = vpop.permute.xlu0 %1236  ;;  %v1242_v38 = vpop.permute.xlu1 %1241 }
 0x18c   : > { %v1247_v46 = vpop.permute.xlu0 %1246  ;;  %v1252_v48 = vpop.permute.xlu1 %1251 }
 0x190   : > { %v1257_v52 = vpop.permute.xlu0 %1256  ;;  %v1262_v57 = vpop.permute.xlu1 %1261 }
 0x194   : > { %v1267_v59 = vpop.permute.xlu0 %1266  ;;  %v1272_v63 = vpop.permute.xlu1 %1271 }
 0x226   : > { %v1826_v28 = vpop.f32.mrb[8].mxu1 }
 0x227   : > { %v1365_v29 = vadd.f32 %v1826_v28, %v1207_v22  ;;  %v1356_v30 = vpop.f32.mrb[9].mxu1 }
 0x228   : > { %v1357_v32 = vadd.f32 %v1356_v30, %v1197_v21  ;;  %v1827_v33 = vpop.f32.mrb[10].mxu1 }
 0x229   : > { %1422 = vst.msk [vmem:[%s2523_s17 + $0x10] sm:$0xff] %vm1419_vm1, %v1365_v29  ;;  %v1368_v34 = vadd.f32 %v1827_v33, %v1212_v24  ;;  %v1359_v35 = vpop.f32.mrb[11].mxu1 }
 0x22a   : > { %1420 = vst.msk [vmem:[%s2523_s17] sm:$0xff] %vm1419_vm1, %v1357_v32  ;;  %v1360_v36 = vadd.f32 %v1359_v35, %v1202_v23 }
 0x22b   : > { %1423 = vst.msk [vmem:[%s2523_s17 + $0x18] sm:$0xff] %vm1419_vm1, %v1368_v34 }
 0x22c   : > { %1421 = vst.msk [vmem:[%s2523_s17 + $0x8] sm:$0xff] %vm1419_vm1, %v1360_v36 }
 0x22e   : > { %v1830_v39 = vpop.f32.mrb[12].mxu1 }
 0x22f   : > { %v1381_v40 = vadd.f32 %v1830_v39, %v1227_v27  ;;  %v1372_v41 = vpop.f32.mrb[13].mxu1 }
 0x230   : > { %v1373_v42 = vadd.f32 %v1372_v41, %v1217_v25  ;;  %v1831_v43 = vpop.f32.mrb[14].mxu1 }
 0x231   : > { %1426 = vst.msk [vmem:[%s2523_s17 + $0x30] sm:$0xff] %vm1419_vm1, %v1381_v40  ;;  %v1384_v44 = vadd.f32 %v1831_v43, %v1232_v31  ;;  %v1375_v45 = vpop.f32.mrb[15].mxu1 }
 0x232   : > { %1424 = vst.msk [vmem:[%s2523_s17 + $0x20] sm:$0xff] %vm1419_vm1, %v1373_v42  ;;  %v1376_v47 = vadd.f32 %v1375_v45, %v1222_v26 }
 0x233   : > { %1427 = vst.msk [vmem:[%s2523_s17 + $0x38] sm:$0xff] %vm1419_vm1, %v1384_v44 }
 0x234   : > { %1425 = vst.msk [vmem:[%s2523_s17 + $0x28] sm:$0xff] %vm1419_vm1, %v1376_v47 }
 0x236   : > { %v1834_v49 = vpop.f32.mrb[16].mxu1 }
 0x237   : > { %v1397_v50 = vadd.f32 %v1834_v49, %v1247_v46  ;;  %v1388_v51 = vpop.f32.mrb[17].mxu1 }
 0x238   : > { %v1389_v53 = vadd.f32 %v1388_v51, %v1237_v37  ;;  %v1835_v54 = vpop.f32.mrb[18].mxu1 }
 0x239   : > { %1430 = vst.msk [vmem:[%s2523_s17 + $0x50] sm:$0xff] %vm1419_vm1, %v1397_v50  ;;  %v1400_v55 = vadd.f32 %v1835_v54, %v1252_v48  ;;  %v1391_v56 = vpop.f32.mrb[19].mxu1 }
 0x23a   : > { %1428 = vst.msk [vmem:[%s2523_s17 + $0x40] sm:$0xff] %vm1419_vm1, %v1389_v53  ;;  %v1392_v58 = vadd.f32 %v1391_v56, %v1242_v38 }
 0x23b   : > { %1431 = vst.msk [vmem:[%s2523_s17 + $0x58] sm:$0xff] %vm1419_vm1, %v1400_v55 }
 0x23c   : > { %1429 = vst.msk [vmem:[%s2523_s17 + $0x48] sm:$0xff] %vm1419_vm1, %v1392_v58 }
 0x23e   : > { %v1838_v60 = vpop.f32.mrb[20].mxu1 }
 0x23f   : > { %v1413_v61 = vadd.f32 %v1838_v60, %v1267_v59  ;;  %v1404_v62 = vpop.f32.mrb[21].mxu1 }
 0x240   : > { %v1405_v0 = vadd.f32 %v1404_v62, %v1257_v52  ;;  %v1839_v1 = vpop.f32.mrb[22].mxu1 }
 0x241   : > { %1434 = vst.msk [vmem:[%s2523_s17 + $0x70] sm:$0xff] %vm1419_vm1, %v1413_v61  ;;  %v1416_v2 = vadd.f32 %v1839_v1, %v1272_v63  ;;  %v1407_v3 = vpop.f32.mrb[23].mxu1 }
 0x242   : > { %1432 = vst.msk [vmem:[%s2523_s17 + $0x60] sm:$0xff] %vm1419_vm1, %v1405_v0  ;;  %v1408_v4 = vadd.f32 %v1407_v3, %v1262_v57 }
 0x243   : > { %1435 = vst.msk [vmem:[%s2523_s17 + $0x78] sm:$0xff] %vm1419_vm1, %v1416_v2 }
 0x244   : > { %1433 = vst.msk [vmem:[%s2523_s17 + $0x68] sm:$0xff] %vm1419_vm1, %v1408_v4 }
 0x245 PF: > { %p1847_p4 = scmp.ge.s32.totalorder %s2074_s26, 2  ;;  %s1478_s7 = sand.u32 1, %s2054_s21  }
 0x246   : > { %s1479_s11 = scalar_lea.sflag [#allocation3], %s1478_s7 }
 0x247   : > { %p1844_p2 = pnand %p1847_p4, %p2164_p8 }
 0x249   : > { %2049 = dma.done.wait (!%p1844_p2), %s1479_s11, 128  }
 0x24a   : > { %2051 = vsyncadd (!%p1844_p2), %s1479_s11, 4294967168  ;;  %s20_s26 = sadd.s32 1, %s2074_s26   ;;  %s2588_s21 = smov %s2058_s22 }
 0x24b   : > { %p17_p3 = scmp.ge.s32.totalorder %s20_s26, 4   ;;  %s2589_s22 = smov %s2062_s23 }
 0x24c   : > { %s2590_s23 = smov %s2170_s10  ;;  %s2591_s24 = smov %s2070_s25 }
 0x24d   : > { %s2592_s25 = smov %s2594_s29  ;;  %19 = sbr.rel (!%p17_p3) target bundleno = 4 (0x4), region = 87 }
 0x254   :  { %1495 = vsyncpa [#allocation3], 1 }
 0x255   :  { %1497 = vsyncpa [#allocation3 + $0x1], 1 }

</bundles_post_ra>
